<compile_context>
chip_gen: v7x
topology: tpu7x:2x2x1
jax: 0.10.0
libtpu: 0.0.40
codegen_flags: <defaults>
</compile_context>

<pallas_src>
import functools

import jax
import jax.numpy as jnp
import numpy as np
from jax.experimental import pallas as pl
from jax.experimental.pallas import tpu as pltpu


# ----------------------------------------------------------------------------
# Kernel
# ----------------------------------------------------------------------------
def _appr_con_kernel(m_ref, x_ref, o_ref, *, img_w):
    """One grid step: NB images, view (NB, L) with L = lane-padded C*H*W.

    m_ref is a resident (4, L) {0,1} boundary-mask block:
      row 0: h > 0     row 1: h < H-1     row 2: w > 0     row 3: w < W-1
    (every row is 0 on lane-padding lanes).
    """
    x = x_ref[...]                                    # (NB, L)
    lanes = x.shape[-1]

    def _nbr(shift, mask_row):
        # Zero-boundary neighbour: result[l] = x[l - shift] * mask[l].
        # Wrap-around across row / channel-plane / pad boundaries is exactly
        # what the mask zeroes out (matching torch's zero padding).
        return pltpu.roll(x, shift % lanes, 1) * m_ref[mask_row:mask_row + 1, :]

    up = _nbr(img_w, 0)                               # x[h-1, w]
    dn = _nbr(-img_w, 1)                              # x[h+1, w]
    lf = _nbr(1, 2)                                   # x[h, w-1]
    rt = _nbr(-1, 3)                                  # x[h, w+1]

    ans = jnp.maximum(jnp.minimum(up, x), jnp.minimum(x, dn))      # ans_col
    ans = ans + jnp.maximum(jnp.minimum(lf, x), jnp.minimum(x, rt))  # + ans_raw

    # torch: if torch.sum(activate_mask) == 0: activate_mask = x[index]
    # (mask is non-negative for the module's non-negative activation inputs,
    #  so sum == 0 <=> all-zero; exact-zero compare is therefore robust).
    total = jnp.sum(ans, axis=-1, keepdims=True)      # (NB, 1)
    o_ref[...] = jnp.where(total == 0.0, x, ans)


# ----------------------------------------------------------------------------
# Wrapper
# ----------------------------------------------------------------------------
def _round_up(a, b):
    return -(-a // b) * b


def _sublane_pack(itemsize):
    # Full-sublane packing factor: 8 for f32, 16 for bf16, 32 for int8.
    return {4: 8, 2: 16, 1: 32}.get(itemsize, 8)


def _choose_tiling(n, row_bytes, itemsize,
                   block_budget_bytes=2 * 1024 * 1024, target_steps=8):
    """Pick (NB images per grid step, number of grid steps G).

    NB is a multiple of the sublane packing so (NB, L) blocks are full (8,128)
    tiles; G targets >= 8 steps (>= 4 per TensorCore on v7x) so the BlockSpec
    pipeline overlaps DMA with the roll/stencil compute, and is kept even so
    both v7x TCs get equal work.  Blocks are capped at ~2 MiB each (safe on
    v7x's 64 MiB VMEM with double buffering + the resident mask block).
    """
    sub = _sublane_pack(itemsize)
    max_nb = max(sub, (block_budget_bytes // max(row_bytes, 1)) // sub * sub)
    n_sub = _round_up(n, sub)
    nb = min(max(_round_up(-(-n_sub // target_steps), sub), sub), max_nb)
    g = -(-n_sub // nb)
    if g > 1 and g % 2:
        g += 1                      # even step count for v7x's two TCs
    return nb, g


def _boundary_masks(c, h, w, lanes, dtype):
    """(4, lanes) {0,1} masks on the flattened (lane-padded) C*H*W axis."""
    hw = h * w
    l = np.arange(lanes)
    valid = l < c * hw
    p = l % hw
    row, col = p // w, p % w
    m = np.stack([valid & (row > 0), valid & (row < h - 1),
                  valid & (col > 0), valid & (col < w - 1)])
    return jnp.asarray(m, dtype=dtype)


def appr_con_solution(x):
    """Pallas implementation of ApprConSolution.forward.  x: (N, C, H, W)."""
    n, c, h, w = x.shape
    chw = c * h * w
    itemsize = x.dtype.itemsize

    # Lane-dense, 128-aligned rows; sublane-aligned, pipeline-friendly batch.
    lanes = _round_up(chw, 128)
    nb, g = _choose_tiling(n, lanes * itemsize, itemsize)
    n_pad = g * nb

    x2 = x.reshape(n, chw)
    if lanes != chw or n_pad != n:
        x2 = jnp.pad(x2, ((0, n_pad - n), (0, lanes - chw)))
    x3 = x2.reshape(g, nb, lanes)

    masks = _boundary_masks(c, h, w, lanes, x.dtype)   # (4, lanes), resident

    kernel = functools.partial(_appr_con_kernel, img_w=w)
    flops = 12 * n_pad * lanes                    # muls+min/max+add+reduce
    bytes_accessed = (2 * n_pad * lanes + 4 * lanes) * itemsize

    out3 = pl.pallas_call(
        kernel,
        out_shape=jax.ShapeDtypeStruct((g, nb, lanes), x.dtype),
        grid=(g,),
        in_specs=[
            # Boundary masks: constant block index -> DMA'd once, stays
            # resident in VMEM across all grid steps.
            pl.BlockSpec((4, lanes), lambda i: (0, 0)),
            pl.BlockSpec((None, nb, lanes), lambda i: (i, 0, 0)),
        ],
        out_specs=pl.BlockSpec((None, nb, lanes), lambda i: (i, 0, 0)),
        compiler_params=pltpu.CompilerParams(
            dimension_semantics=("parallel",),
            # Double-buffered <=2 MiB in/out blocks + resident masks +
            # temporaries stay well under 32 MiB: fits v7x's 64 MiB VMEM and
            # v5e needs the explicit limit (its scoped default is 16 MiB).
            vmem_limit_bytes=32 * 1024 * 1024,
        ),
        cost_estimate=pl.CostEstimate(
            flops=flops, transcendentals=0, bytes_accessed=bytes_accessed),
        # input_output_aliases={1: 0} would also save the output HBM
        # allocation; left off because x3 is already a fresh intermediate and
        # eager-mode donation can emit warnings.
    )(masks, x3)

    out = out3.reshape(n_pad, lanes)[:n, :chw]
    return out.reshape(n, c, h, w)


# ----------------------------------------------------------------------------
# Pure-JAX reference (independent code path: concat-based zero shifts).
# ----------------------------------------------------------------------------
def _shift_zero(a, sh, axis):
    """result[..., i, ...] = a[..., i - sh, ...]; zero fill at the border."""
    zshape = list(a.shape)
    zshape[axis] = abs(sh)
    z = jnp.zeros(zshape, a.dtype)
    sl = [slice(None)] * a.ndim
    if sh > 0:
        sl[axis] = slice(0, a.shape[axis] - sh)
        return jnp.concatenate([z, a[tuple(sl)]], axis=axis)
    sl[axis] = slice(-sh, None)
    return jnp.concatenate([a[tuple(sl)], z], axis=axis)


def _forward_few_ref(x):
    """forward_few of ApprConSolution on a (C, H, W) tensor (zero boundary)."""
    x_dn = _shift_zero(x, 1, 1)    # x[h-1, w]
    x_up = _shift_zero(x, -1, 1)   # x[h+1, w]
    ans_col = jnp.maximum(jnp.minimum(x_dn, x), jnp.minimum(x, x_up))
    x_l = _shift_zero(x, 1, 2)     # x[h, w-1]
    x_r = _shift_zero(x, -1, 2)    # x[h, w+1]
    ans_raw = jnp.maximum(jnp.minimum(x_l, x), jnp.minimum(x, x_r))
    return ans_col + ans_raw


def _reference(x):
    outs = []
    for b in range(x.shape[0]):
        mask = _forward_few_ref(x[b])
        outs.append(jnp.where(jnp.sum(mask) == 0.0, x[b], mask))
    return jnp.stack(outs, axis=0)


if __name__ == "__main__":
    key = jax.random.PRNGKey(0)
    n, c, h, w = 2, 4, 16, 16
    x = jax.random.uniform(key, (n, c, h, w), dtype=jnp.float32)
    # Sparse, non-negative activation-mask-like input (as the module expects).
    x = jnp.where(x > 0.7, x, 0.0)
    # Image 1: a single isolated nonzero pixel -> forward_few mask is all-zero
    # -> exercises the sum(mask)==0 passthrough branch.
    x = x.at[1].set(0.0)
    x = x.at[1, 0, 5, 7].set(1.0)

    out = jax.block_until_ready(appr_con_solution(x))
    ref = _reference(x)
    assert out.shape == x.shape
    np.testing.assert_allclose(np.asarray(out), np.asarray(ref), atol=1e-6)
    print("KERNEL_OK")
</pallas_src>

<mosaic_0001>
module attributes {stable_mosaic.version = 11 : i64} {
  func.func @_appr_con_kernel(%arg0: i32, %arg1: memref<4x1024xf32, #tpu.memory_space<vmem>>, %arg2: memref<1x8x1024xf32, #tpu.memory_space<vmem>>, %arg3: memref<1x8x1024xf32, #tpu.memory_space<vmem>>) attributes {dimension_semantics = [#tpu.dimension_semantics<parallel>], iteration_bounds = array<i64: 1>, scalar_prefetch = 0 : i64, scratch_operands = 0 : i64, tpu.core_type = #tpu.core_type<tc>, window_params = [{pipeline_mode = #tpu.pipeline_mode<synchronous>, transform_indices = @transform_0, window_bounds = array<i64: 4, 1024>}, {transform_indices = @transform_1, window_bounds = array<i64: 1, 8, 1024>}, {transform_indices = @transform_2, window_bounds = array<i64: 1, 8, 1024>}]} {
    %c0 = arith.constant 0 : index
    %c0_0 = arith.constant 0 : index
    %c0_1 = arith.constant 0 : index
    %0 = vector.load %arg2[%c0, %c0_0, %c0_1] : memref<1x8x1024xf32, #tpu.memory_space<vmem>>, vector<1x8x1024xf32>
    %1 = vector.shape_cast %0 : vector<1x8x1024xf32> to vector<8x1024xf32>
    %c16_i32 = arith.constant 16 : i32
    %2 = tpu.dynamic_rotate %1 by %c16_i32 dim 1 : vector<8x1024xf32>, i32 -> vector<8x1024xf32>
    %c0_2 = arith.constant 0 : index
    %c0_3 = arith.constant 0 : index
    %3 = vector.load %arg1[%c0_2, %c0_3] : memref<4x1024xf32, #tpu.memory_space<vmem>>, vector<1x1024xf32>
    %4 = vector.broadcast %3 : vector<1x1024xf32> to vector<8x1024xf32>
    %5 = arith.mulf %2, %4 : vector<8x1024xf32>
    %c1008_i32 = arith.constant 1008 : i32
    %6 = tpu.dynamic_rotate %1 by %c1008_i32 dim 1 : vector<8x1024xf32>, i32 -> vector<8x1024xf32>
    %c1 = arith.constant 1 : index
    %c0_4 = arith.constant 0 : index
    %7 = vector.load %arg1[%c1, %c0_4] : memref<4x1024xf32, #tpu.memory_space<vmem>>, vector<1x1024xf32>
    %8 = vector.broadcast %7 : vector<1x1024xf32> to vector<8x1024xf32>
    %9 = arith.mulf %6, %8 : vector<8x1024xf32>
    %c1_i32 = arith.constant 1 : i32
    %10 = tpu.dynamic_rotate %1 by %c1_i32 dim 1 : vector<8x1024xf32>, i32 -> vector<8x1024xf32>
    %c2 = arith.constant 2 : index
    %c0_5 = arith.constant 0 : index
    %11 = vector.load %arg1[%c2, %c0_5] : memref<4x1024xf32, #tpu.memory_space<vmem>>, vector<1x1024xf32>
    %12 = vector.broadcast %11 : vector<1x1024xf32> to vector<8x1024xf32>
    %13 = arith.mulf %10, %12 : vector<8x1024xf32>
    %c1023_i32 = arith.constant 1023 : i32
    %14 = tpu.dynamic_rotate %1 by %c1023_i32 dim 1 : vector<8x1024xf32>, i32 -> vector<8x1024xf32>
    %c3 = arith.constant 3 : index
    %c0_6 = arith.constant 0 : index
    %15 = vector.load %arg1[%c3, %c0_6] : memref<4x1024xf32, #tpu.memory_space<vmem>>, vector<1x1024xf32>
    %16 = vector.broadcast %15 : vector<1x1024xf32> to vector<8x1024xf32>
    %17 = arith.mulf %14, %16 : vector<8x1024xf32>
    %18 = arith.minimumf %5, %1 : vector<8x1024xf32>
    %19 = arith.minimumf %1, %9 : vector<8x1024xf32>
    %20 = arith.maximumf %18, %19 : vector<8x1024xf32>
    %21 = arith.minimumf %13, %1 : vector<8x1024xf32>
    %22 = arith.minimumf %1, %17 : vector<8x1024xf32>
    %23 = arith.maximumf %21, %22 : vector<8x1024xf32>
    %24 = arith.addf %20, %23 : vector<8x1024xf32>
    %cst = arith.constant dense<0.000000e+00> : vector<8xf32>
    %25 = vector.multi_reduction <add>, %24, %cst [1] : vector<8x1024xf32> to vector<8xf32>
    %26 = vector.shape_cast %25 : vector<8xf32> to vector<8x1xf32>
    %cst_7 = arith.constant 0.000000e+00 : f32
    %27 = vector.broadcast %cst_7 : f32 to vector<8x1xf32>
    %28 = arith.cmpf oeq, %26, %27 : vector<8x1xf32>
    %29 = vector.shape_cast %28 : vector<8x1xi1> to vector<8x1xi1>
    %30 = vector.broadcast %29 : vector<8x1xi1> to vector<8x1024xi1>
    %31 = arith.select %30, %1, %24 : vector<8x1024xi1>, vector<8x1024xf32>
    %c0_8 = arith.constant 0 : index
    %c0_9 = arith.constant 0 : index
    %c0_10 = arith.constant 0 : index
    %32 = vector.load %arg3[%c0_8, %c0_9, %c0_10] : memref<1x8x1024xf32, #tpu.memory_space<vmem>>, vector<1x8x1024xf32>
    %33 = vector.shape_cast %32 : vector<1x8x1024xf32> to vector<8x1024xf32>
    %34 = vector.shape_cast %31 : vector<8x1024xf32> to vector<1x8x1024xf32>
    tpu.vector_store %arg3[%c0_8, %c0_9, %c0_10], %34 {strides = array<i32>} : memref<1x8x1024xf32, #tpu.memory_space<vmem>>, vector<1x8x1024xf32>,
    return
  }
  func.func @transform_0(%arg0: i32) -> (i32, i32) {
    %c0_i32 = arith.constant 0 : i32
    %c0_i32_0 = arith.constant 0 : i32
    %c0_i32_1 = arith.constant 0 : i32
    return %c0_i32, %c0_i32_0 : i32, i32
  }
  func.func @transform_1(%arg0: i32) -> (i32, i32, i32) {
    %c0_i32 = arith.constant 0 : i32
    %c0_i32_0 = arith.constant 0 : i32
    %c0_i32_1 = arith.constant 0 : i32
    return %arg0, %c0_i32, %c0_i32_0 : i32, i32, i32
  }
  func.func @transform_2(%arg0: i32) -> (i32, i32, i32) {
    %c0_i32 = arith.constant 0 : i32
    %c0_i32_0 = arith.constant 0 : i32
    %c0_i32_1 = arith.constant 0 : i32
    return %arg0, %c0_i32, %c0_i32_0 : i32, i32, i32
  }
}

</mosaic_0001>

<bundles_post_ra>
// kernel: tpu_custom_call.1
= control target key start
LH: loop header
LB: loop body
LE: loop exit
PB: predicated region body
PF: predicated region fallthrough
CT: control target
= control target key end

     0   :  { %7 = vsyncpa [#allocation3], 0  ;;  %s969_s0 = inlined_call_operand.hbm [shape: f32[4,1024], index: 0, kind: input, shape index: {}]   ;;  %s970_s1 = inlined_call_operand.hbm [shape: f32[1,8,1024], index: 1, kind: input, shape index: {}]   ;;  %s971_s2 = inlined_call_operand.hbm [shape: f32[1,8,1024], index: 2, kind: output, shape index: {}]  }
   0x1   :  { %8 = vsyncpa [#allocation6], 0 }
   0x2   :  { %9 = vsyncpa [#allocation4], 0  ;;  %s528_s9 = smov [#allocation2]   ;;  %s529_s11 = smov [#allocation5]  }
   0x3   :  { %s16_s10 = sshll.u32 %s528_s9, 4  ;;  %s26_s12 = sshll.u32 %s529_s11, 4  ;;  %s17_s10 = int_to_ptr.vmem [resolvable:$true] %s16_s10  ;;  %s27_s12 = int_to_ptr.vmem [resolvable:$true] %s26_s12 }
   0x4   :  { %s456_s15 = scalar_lea.hbm %s969_s0, 512 }
   0x5   :  { %p457_p0 = scmp.ne.s32.totalorder %s969_s0, %s456_s15  ;;  %p460_p1 = scmp.lt.u32.totalorder %s456_s15, %s969_s0 }
   0x7   :  { %p462_p2 = pnand %p460_p1, %p457_p0 }
   0x9   :  { %465 = shalt.err (!%p462_p2)
}
   0xa   :  { %s466_s20 = scalar_lea.vmem %s17_s10, 512  ;;  %p471_p4 = scmp.lt.s32.totalorder %s17_s10, %s17_s10 }
   0xb   :  { %p467_p3 = scmp.ne.s32.totalorder %s17_s10, %s466_s20  ;;  %p472_p5 = scmp.lt.s32.totalorder %s466_s20, %s466_s20 }
   0xd   :  { %p473_p6 = por %p472_p5, %p471_p4 }
   0xf   :  { %p474_p7 = pnand %p473_p6, %p467_p3 }
  0x11   :  { %477 = shalt.err (!%p474_p7)
}
  0x12   :  { %19 = dma.hbm_to_vmem [thread:$0]  %s969_s0, 512, %s17_s10, [#allocation3]  }
  0x13   :  { %s478_s25 = scalar_lea.hbm %s970_s1, 1024 }
  0x14   :  { %p479_p8 = scmp.ne.s32.totalorder %s970_s1, %s478_s25  ;;  %p482_p9 = scmp.lt.u32.totalorder %s478_s25, %s970_s1 }
  0x16   :  { %p484_p10 = pnand %p482_p9, %p479_p8 }
  0x18   :  { %487 = shalt.err (!%p484_p10)
}
  0x19   :  { %s488_s30 = scalar_lea.vmem %s27_s12, 1024  ;;  %p493_p12 = scmp.lt.s32.totalorder %s27_s12, %s27_s12 }
  0x1a   :  { %p489_p11 = scmp.ne.s32.totalorder %s27_s12, %s488_s30  ;;  %p494_p13 = scmp.lt.s32.totalorder %s488_s30, %s488_s30 }
  0x1c   :  { %p495_p0 = por %p494_p13, %p493_p12 }
  0x1e   :  { %p496_p1 = pnand %p495_p0, %p489_p11 }
  0x20   :  { %499 = shalt.err (!%p496_p1)
}
  0x21   :  { %29 = dma.hbm_to_vmem [thread:$0]  %s970_s1, 1024, %s27_s12, [#allocation6]  }
  0x22   :  { %522 = dma.done.wait [#allocation3], 512  }
  0x23   :  { %523 = vsyncadd [#allocation3], 4294966784 }
  0x24   :  { %524 = dma.done.wait [#allocation6], 1024  }
  0x25   :  { %525 = vsyncadd [#allocation6], 4294966272  ;;  %v574_v0 = vld [vmem:[#allocation5 + $0x38] sm:$0xff]  ;;  %v576_v1 = vld [vmem:[#allocation5] sm:$0xff]  ;;  %s530_s4 = smov 16   ;;  %s531_s5 = smov 112   ;;  %v60_v16 = vlaneseq }
  0x26   :  { %58 = vrot.lane.b32.xlu1 %v574_v0, %s530_s4  ;;  %44 = vrot.lane.b32.xlu0 %v576_v1, %s530_s4  ;;  %v582_v2 = vld [vmem:[#allocation5 + $0x8] sm:$0xff]  ;;  %v588_v3 = vld [vmem:[#allocation5 + $0x10] sm:$0xff]  ;;  %s532_s1 = smov 1   ;;  %s533_s6 = smov 127   ;;  %v603_v4 = vld [vmem:[#allocation5 + $0x18] sm:$0xff] }
  0x27   :  { %v612_v5 = vld [vmem:[#allocation5 + $0x20] sm:$0xff]  ;;  %v621_v6 = vld [vmem:[#allocation5 + $0x28] sm:$0xff]  ;;  %v630_v7 = vld [vmem:[#allocation5 + $0x30] sm:$0xff]  ;;  %v74_v19 = vshrl.u32 %v60_v16, 7  ;;  %v662_v22 = vand.u32 127, %v60_v16  ;;  %s534_s7 = smov [#allocation7]  }
  0x28   :  { %v668_v25 = vld [vmem:[#allocation2] ss:$4 sm:$0xff]  ;;  %v674_v28 = vld [vmem:[#allocation2 + $0x1] ss:$4 sm:$0xff]  ;;  %v676_v29 = vld [vmem:[#allocation2 + $0x2] ss:$4 sm:$0xff] }
  0x29   :  { %v664_v23 = vsub.s32 0, %v74_v19  ;;  %v666_v24 = vsub.s32 1, %v74_v19  ;;  %vm62_vm0 = vcmp.lt.s32.totalorder %v662_v22, 16  ;;  %vm137_vm1 = vcmp.lt.s32.totalorder %v662_v22, 112  ;;  %v680_v30 = vld [vmem:[#allocation2 + $0x3] ss:$4 sm:$0xff] }
  0x2a   :  { %121 = vrot.lane.b32.xlu1 %v576_v1, %s531_s5  ;;  %46 = vrot.lane.b32.xlu0 %v582_v2, %s530_s4  ;;  %v682_v31 = vsub.s32 2, %v74_v19  ;;  %vm213_vm2 = vcmp.lt.s32.totalorder %v662_v22, 1  ;;  %v689_v34 = vsub.s32 3, %v74_v19  ;;  %v701_v40 = vsub.s32 4, %v74_v19  ;;  %s439_s8 = sshll.u32 %s534_s7, 4  ;;  %s440_s8 = int_to_ptr.vmem [resolvable:$true] %s439_s8 }
  0x2b   :  { %v76_v32 = vrot.slane %v668_v25, %v664_v23  ;;  %v80_v33 = vrot.slane %v668_v25, %v666_v24  ;;  %v152_v35 = vrot.slane %v674_v28, %v664_v23  ;;  %v156_v36 = vrot.slane %v674_v28, %v666_v24  ;;  %s500_s9 = scalar_lea.vmem %s440_s8, 1024  ;;  %p505_p3 = scmp.lt.s32.totalorder %s440_s8, %s440_s8 }
  0x2c   :  { %v232_v37 = vrot.slane %v676_v29, %v666_v24  ;;  %v228_v41 = vrot.slane %v676_v29, %v664_v23  ;;  %vm289_vm3 = vcmp.lt.s32.totalorder %v662_v22, 127  ;;  %v304_v42 = vrot.slane %v680_v30, %v664_v23  ;;  %p501_p2 = scmp.ne.s32.totalorder %s440_s8, %s500_s9  ;;  %p506_p4 = scmp.lt.s32.totalorder %s500_s9, %s500_s9 }
  0x2d   :  { %v708_v43 = vsub.s32 5, %v74_v19  ;;  %v308_v44 = vrot.slane %v680_v30, %v666_v24  ;;  %v160_v45 = vrot.slane %v674_v28, %v682_v31  ;;  %v84_v46 = vrot.slane %v668_v25, %v682_v31 }
  0x2e   :  { %125 = vrot.lane.b32.xlu1 %v588_v3, %s531_s5  ;;  %123 = vrot.lane.b32.xlu0 %v582_v2, %s531_s5  ;;  %v312_v47 = vrot.slane %v680_v30, %v682_v31  ;;  %v236_v48 = vrot.slane %v676_v29, %v682_v31  ;;  %v164_v49 = vrot.slane %v674_v28, %v689_v34  ;;  %v770_v59 = vsub.s32 6, %v74_v19  ;;  %p507_p5 = por %p506_p4, %p505_p3 }
  0x2f   :  { %v88_v50 = vrot.slane %v668_v25, %v689_v34 }
  0x30   :  { %p508_p6 = pnand %p507_p5, %p501_p2 }
  0x32   :  { %199 = vrot.lane.b32.xlu1 %v582_v2, %s532_s1  ;;  %197 = vrot.lane.b32.xlu0 %v576_v1, %s532_s1 }
  0x36   :  { %273 = vrot.lane.b32.xlu1 %v576_v1, %s533_s6  ;;  %211 = vrot.lane.b32.xlu0 %v574_v0, %s532_s1 }
  0x3a   :  { %277 = vrot.lane.b32.xlu1 %v588_v3, %s533_s6  ;;  %275 = vrot.lane.b32.xlu0 %v582_v2, %s533_s6 }
  0x3e   :  { %127 = vrot.lane.b32.xlu1 %v603_v4, %s531_s5  ;;  %48 = vrot.lane.b32.xlu0 %v588_v3, %s530_s4 }
  0x42   :  { %279 = vrot.lane.b32.xlu1 %v603_v4, %s533_s6  ;;  %201 = vrot.lane.b32.xlu0 %v588_v3, %s532_s1 }
  0x46   :  { %129 = vrot.lane.b32.xlu1 %v612_v5, %s531_s5  ;;  %50 = vrot.lane.b32.xlu0 %v603_v4, %s530_s4 }
  0x4a   :  { %281 = vrot.lane.b32.xlu1 %v612_v5, %s533_s6  ;;  %203 = vrot.lane.b32.xlu0 %v603_v4, %s532_s1 }
  0x4e   :  { %131 = vrot.lane.b32.xlu1 %v621_v6, %s531_s5  ;;  %52 = vrot.lane.b32.xlu0 %v612_v5, %s530_s4 }
  0x52   :  { %283 = vrot.lane.b32.xlu1 %v621_v6, %s533_s6  ;;  %205 = vrot.lane.b32.xlu0 %v612_v5, %s532_s1 }
  0x56   :  { %133 = vrot.lane.b32.xlu1 %v630_v7, %s531_s5  ;;  %54 = vrot.lane.b32.xlu0 %v621_v6, %s530_s4 }
  0x5a   :  { %285 = vrot.lane.b32.xlu1 %v630_v7, %s533_s6  ;;  %207 = vrot.lane.b32.xlu0 %v621_v6, %s532_s1 }
  0x5e   :  { %135 = vrot.lane.b32.xlu1 %v574_v0, %s531_s5  ;;  %56 = vrot.lane.b32.xlu0 %v630_v7, %s530_s4 }
  0x62   :  { %287 = vrot.lane.b32.xlu1 %v574_v0, %s533_s6  ;;  %209 = vrot.lane.b32.xlu0 %v630_v7, %s532_s1 }
  0x98   :  { %v646_v8 = vpop.permute.xlu1 %58  ;;  %v45_v9 = vpop.permute.xlu0 %44 }
  0x99   :  { %v70_v62 = vsel %vm62_vm0, %v646_v8, %v45_v9 }
  0x9c   :  { %v648_v10 = vpop.permute.xlu1 %121  ;;  %v650_v11 = vpop.permute.xlu0 %46 }
  0x9d   :  { %v69_v63 = vsel %vm62_vm0, %v45_v9, %v650_v11 }
  0xa0   :  { %v652_v12 = vpop.permute.xlu1 %125  ;;  %v124_v13 = vpop.permute.xlu0 %123 }
  0xa1   :  { %v143_v23 = vsel %vm137_vm1, %v124_v13, %v652_v12  ;;  %v144_v24 = vsel %vm137_vm1, %v648_v10, %v124_v13 }
  0xa2   :  { %v190_v60 = vmul.f32 %v156_v36, %v143_v23  ;;  %v176_v36 = vrot.slane %v674_v28, %v770_v59 }
  0xa4   :  { %v654_v14 = vpop.permute.xlu1 %199  ;;  %v198_v15 = vpop.permute.xlu0 %197  ;;  %v358_v23 = vmin.f32 %v582_v2, %v190_v60 }
  0xa5   :  { %v220_v16 = vsel %vm213_vm2, %v198_v15, %v654_v14 }
  0xa6   :  { %v266_v56 = vmul.f32 %v232_v37, %v220_v16 }
  0xa8   :  { %v656_v17 = vpop.permute.xlu1 %273  ;;  %v658_v18 = vpop.permute.xlu0 %211 }
  0xac   :  { %v660_v20 = vpop.permute.xlu1 %277  ;;  %v276_v21 = vpop.permute.xlu0 %275 }
  0xad   :  { %v295_v52 = vsel %vm289_vm3, %v276_v21, %v660_v20  ;;  %v296_v53 = vsel %vm289_vm3, %v656_v17, %v276_v21  ;;  %v221_v21 = vsel %vm213_vm2, %v658_v18, %v198_v15  ;;  %v772_v15 = vsub.s32 7, %v74_v19 }
  0xae   :  { %v341_v31 = vmul.f32 %v304_v42, %v296_v53  ;;  %v342_v61 = vmul.f32 %v308_v44, %v295_v52  ;;  %v265_v51 = vmul.f32 %v228_v41, %v221_v21  ;;  %v113_v44 = vmul.f32 %v76_v32, %v70_v62 }
  0xaf   :  { %v114_v52 = vmul.f32 %v80_v33, %v69_v63  ;;  %v189_v53 = vmul.f32 %v152_v35, %v144_v24  ;;  %v248_v35 = vrot.slane %v676_v29, %v708_v43 }
  0xb0   :  { %v670_v26 = vpop.permute.xlu1 %127  ;;  %v672_v27 = vpop.permute.xlu0 %48  ;;  %v381_v57 = vmin.f32 %v576_v1, %v341_v31  ;;  %v382_v19 = vmin.f32 %v582_v2, %v342_v61  ;;  %v374_v61 = vmin.f32 %v266_v56, %v582_v2  ;;  %v373_v62 = vmin.f32 %v265_v51, %v576_v1 }
  0xb1   :  { %v142_v13 = vsel %vm137_vm1, %v652_v12, %v670_v26  ;;  %v68_v42 = vsel %vm62_vm0, %v650_v11, %v672_v27  ;;  %v357_v21 = vmin.f32 %v576_v1, %v189_v53 }
  0xb2   :  { %v191_v41 = vmul.f32 %v160_v45, %v142_v13  ;;  %v115_v11 = vmul.f32 %v84_v46, %v68_v42  ;;  %v349_v45 = vmin.f32 %v113_v44, %v576_v1  ;;  %v350_v46 = vmin.f32 %v114_v52, %v582_v2 }
  0xb3   :  { %v389_v24 = vmax.f32 %v373_v62, %v381_v57  ;;  %v390_v56 = vmax.f32 %v374_v61, %v382_v19  ;;  %v975_v61 = vrot.slane %v676_v29, %v701_v40 }
  0xb4   :  { %v697_v38 = vpop.permute.xlu1 %279  ;;  %v699_v39 = vpop.permute.xlu0 %201  ;;  %v359_v51 = vmin.f32 %v588_v3, %v191_v41  ;;  %v351_v31 = vmin.f32 %v115_v11, %v588_v3  ;;  %v365_v19 = vmax.f32 %v349_v45, %v357_v21  ;;  %v328_v21 = vrot.slane %v680_v30, %v770_v59 }
  0xb5   :  { %v294_v37 = vsel %vm289_vm3, %v660_v20, %v697_v38  ;;  %v219_v12 = vsel %vm213_vm2, %v654_v14, %v699_v39  ;;  %v180_v20 = vrot.slane %v674_v28, %v772_v15  ;;  %v100_v14 = vrot.slane %v668_v25, %v770_v59 }
  0xb6   :  { %v343_v63 = vmul.f32 %v312_v47, %v294_v37  ;;  %v267_v16 = vmul.f32 %v236_v48, %v219_v12  ;;  %v972_v37 = vrot.slane %v680_v30, %v689_v34 }
  0xb8   :  { %v732_v54 = vpop.permute.xlu1 %129  ;;  %v734_v55 = vpop.permute.xlu0 %50  ;;  %v383_v52 = vmin.f32 %v588_v3, %v343_v63  ;;  %v977_v63 = vrot.slane %v668_v25, %v701_v40 }
  0xb9   :  { %v141_v13 = vsel %vm137_vm1, %v670_v26, %v732_v54  ;;  %v67_v47 = vsel %vm62_vm0, %v672_v27, %v734_v55  ;;  %v375_v27 = vmin.f32 %v267_v16, %v588_v3 }
  0xbc   :  { %v282_v58 = vpop.permute.xlu1 %281  ;;  %v204_v9 = vpop.permute.xlu0 %203 }
  0xbd   :  { %v293_v57 = vsel %vm289_vm3, %v697_v38, %v282_v58  ;;  %v218_v60 = vsel %vm213_vm2, %v699_v39, %v204_v9  ;;  %v366_v39 = vmax.f32 %v350_v46, %v358_v23  ;;  %v862_v23 = vadd.f32 %v389_v24, %v365_v19 }
  0xbe   :  { %v344_v12 = vmul.f32 %v972_v37, %v293_v57  ;;  %v391_v57 = vmax.f32 %v375_v27, %v383_v52  ;;  %v978_v19 = vrot.slane %v674_v28, %v708_v43  ;;  %v980_v37 = vrot.slane %v680_v30, %v708_v43 }
  0xc0   :  { %v132_v32 = vpop.permute.xlu1 %131  ;;  %v53_v33 = vpop.permute.xlu0 %52 }
  0xc1   :  { %v140_v53 = vsel %vm137_vm1, %v732_v54, %v132_v32  ;;  %v66_v38 = vsel %vm62_vm0, %v734_v55, %v53_v33  ;;  %v973_v54 = vrot.slane %v676_v29, %v689_v34  ;;  %v974_v55 = vrot.slane %v680_v30, %v701_v40 }
  0xc2   :  { %v117_v16 = vmul.f32 %v977_v63, %v66_v38  ;;  %v104_v34 = vrot.slane %v668_v25, %v772_v15 }
  0xc3   :  { %v268_v41 = vmul.f32 %v973_v54, %v218_v60 }
  0xc4   :  { %v284_v48 = vpop.permute.xlu1 %283  ;;  %v206_v42 = vpop.permute.xlu0 %205  ;;  %v353_v27 = vmin.f32 %v117_v16, %v612_v5 }
  0xc5   :  { %v292_v44 = vsel %vm289_vm3, %v282_v58, %v284_v48  ;;  %v217_v26 = vsel %vm213_vm2, %v204_v9, %v206_v42  ;;  %v192_v58 = vmul.f32 %v164_v49, %v141_v13  ;;  %v116_v9 = vmul.f32 %v88_v50, %v67_v47 }
  0xc6   :  { %v345_v11 = vmul.f32 %v974_v55, %v292_v44  ;;  %v269_v49 = vmul.f32 %v975_v61, %v217_v26  ;;  %v976_v50 = vrot.slane %v674_v28, %v701_v40  ;;  %v864_v13 = vadd.f32 %v390_v56, %v366_v39 }
  0xc7   :  { %v367_v47 = vmax.f32 %v351_v31, %v359_v51  ;;  %v360_v60 = vmin.f32 %v603_v4, %v192_v58  ;;  %v352_v44 = vmin.f32 %v116_v9, %v603_v4  ;;  %v376_v38 = vmin.f32 %v268_v41, %v603_v4 }
  0xc8   :  { %v134_v62 = vpop.permute.xlu1 %133  ;;  %v55_v45 = vpop.permute.xlu0 %54  ;;  %v193_v46 = vmul.f32 %v976_v50, %v140_v53  ;;  %v384_v53 = vmin.f32 %v603_v4, %v344_v12  ;;  %v385_v24 = vmin.f32 %v612_v5, %v345_v11  ;;  %v377_v56 = vmin.f32 %v269_v49, %v612_v5 }
  0xc9   :  { %v139_v40 = vsel %vm137_vm1, %v132_v32, %v134_v62  ;;  %v65_v26 = vsel %vm62_vm0, %v53_v33, %v55_v45  ;;  %v979_v58 = vrot.slane %v668_v25, %v708_v43  ;;  %v332_v41 = vrot.slane %v680_v30, %v772_v15 }
  0xca   :  { %v361_v52 = vmin.f32 %v612_v5, %v193_v46  ;;  %v194_v39 = vmul.f32 %v978_v19, %v139_v40  ;;  %v252_v55 = vrot.slane %v676_v29, %v770_v59  ;;  %v392_v11 = vmax.f32 %v376_v38, %v384_v53 }
  0xcb   :  { %v118_v9 = vmul.f32 %v979_v58, %v65_v26  ;;  %v393_v61 = vmax.f32 %v377_v56, %v385_v24 }
  0xcc   :  { %v286_v51 = vpop.permute.xlu1 %285  ;;  %v208_v31 = vpop.permute.xlu0 %207 }
  0xcd   :  { %v291_v32 = vsel %vm289_vm3, %v284_v48, %v286_v51  ;;  %v216_v33 = vsel %vm213_vm2, %v206_v42, %v208_v31  ;;  %v405_v48 = vadd.f32 %v864_v13, %v862_v23  ;;  %v896_v42 = vadd.f32 %v391_v57, %v367_v47 }
  0xce   :  { %v346_v12 = vmul.f32 %v980_v37, %v291_v32  ;;  %v270_v54 = vmul.f32 %v248_v35, %v216_v33  ;;  %v368_v35 = vmax.f32 %v352_v44, %v360_v60  ;;  %v369_v47 = vmax.f32 %v353_v27, %v361_v52 }
  0xcf   :  { %v362_v57 = vmin.f32 %v621_v6, %v194_v39  ;;  %v354_v40 = vmin.f32 %v118_v9, %v621_v6  ;;  %v406_v60 = vadd.f32 %v405_v48, %v896_v42 }
  0xd0   :  { %v386_v49 = vmin.f32 %v621_v6, %v346_v12  ;;  %v378_v50 = vmin.f32 %v270_v54, %v621_v6  ;;  %v136_v46 = vpop.permute.xlu1 %135  ;;  %v57_v43 = vpop.permute.xlu0 %56  ;;  %v400_v44 = vadd.f32 %v392_v11, %v368_v35  ;;  %v401_v53 = vadd.f32 %v393_v61, %v369_v47 }
  0xd1   :  { %v138_v63 = vsel %vm137_vm1, %v134_v62, %v136_v46  ;;  %v145_v16 = vsel %vm137_vm1, %v136_v46, %v648_v10  ;;  %v64_v30 = vsel %vm62_vm0, %v55_v45, %v57_v43  ;;  %v63_v26 = vsel %vm62_vm0, %v57_v43, %v646_v8 }
  0xd2   :  { %v195_v62 = vmul.f32 %v176_v36, %v138_v63  ;;  %v119_v10 = vmul.f32 %v100_v14, %v64_v30  ;;  %v256_v45 = vrot.slane %v676_v29, %v772_v15  ;;  %v394_v38 = vmax.f32 %v378_v50, %v386_v49 }
  0xd3   :  { %v196_v8 = vmul.f32 %v180_v20, %v145_v16  ;;  %v120_v52 = vmul.f32 %v104_v34, %v63_v26  ;;  %v370_v59 = vmax.f32 %v354_v40, %v362_v57  ;;  %v407_v19 = vadd.f32 %v406_v60, %v400_v44 }
  0xd4   :  { %v288_v24 = vpop.permute.xlu1 %287  ;;  %v210_v56 = vpop.permute.xlu0 %209  ;;  %v363_v15 = vmin.f32 %v630_v7, %v195_v62  ;;  %v355_v20 = vmin.f32 %v119_v10, %v630_v7 }
  0xd5   :  { %v290_v36 = vsel %vm289_vm3, %v286_v51, %v288_v24  ;;  %v297_v25 = vsel %vm289_vm3, %v288_v24, %v656_v17  ;;  %v214_v29 = vsel %vm213_vm2, %v210_v56, %v658_v18  ;;  %v215_v28 = vsel %vm213_vm2, %v208_v31, %v210_v56 }
  0xd6   :  { %v347_v14 = vmul.f32 %v328_v21, %v290_v36  ;;  %v348_v27 = vmul.f32 %v332_v41, %v297_v25  ;;  %v271_v34 = vmul.f32 %v252_v55, %v215_v28  ;;  %v272_v51 = vmul.f32 %v256_v45, %v214_v29 }
  0xd7   :  { %v364_v32 = vmin.f32 %v574_v0, %v196_v8  ;;  %v356_v18 = vmin.f32 %v120_v52, %v574_v0  ;;  %v402_v31 = vadd.f32 %v394_v38, %v370_v59  ;;  %v371_v39 = vmax.f32 %v355_v20, %v363_v15 }
  0xd8   :  { %v387_v17 = vmin.f32 %v630_v7, %v347_v14  ;;  %v388_v33 = vmin.f32 %v574_v0, %v348_v27  ;;  %v379_v21 = vmin.f32 %v271_v34, %v630_v7  ;;  %v380_v22 = vmin.f32 %v272_v51, %v574_v0 }
  0xd9   :  { %v408_v37 = vadd.f32 %v407_v19, %v401_v53  ;;  %v372_v12 = vmax.f32 %v356_v18, %v364_v32 }
  0xda   :  { %v395_v58 = vmax.f32 %v379_v21, %v387_v17  ;;  %v396_v9 = vmax.f32 %v380_v22, %v388_v33 }
  0xdb   :  { %v409_v48 = vadd.f32 %v408_v37, %v402_v31 }
  0xdc   :  { %v403_v54 = vadd.f32 %v395_v58, %v371_v39  ;;  %v404_v41 = vadd.f32 %v396_v9, %v372_v12 }
  0xde   :  { %v410_v55 = vadd.f32 %v409_v48, %v403_v54 }
  0xe0   :  { %v411_v11 = vadd.f32 %v410_v55, %v404_v41 }
  0xe2   :  { %412 = vadd.xlane.f32.xlu0 %v411_v11 }
 0x16f   :  { %v413_v61 = vpop.xlane.xlu0 %412 }
 0x170   :  { %vm414_vm4 = vcmp.eq.f32.partialorder %v413_v61, 0.0 }
 0x171   :  { %v417_v49 = vsel %vm414_vm4, %v576_v1, %v862_v23  ;;  %v418_v50 = vsel %vm414_vm4, %v582_v2, %v864_v13  ;;  %v419_v46 = vsel %vm414_vm4, %v588_v3, %v896_v42  ;;  %v420_v43 = vsel %vm414_vm4, %v603_v4, %v400_v44 }
 0x172   :  { %v421_v35 = vsel %vm414_vm4, %v612_v5, %v401_v53  ;;  %v422_v63 = vsel %vm414_vm4, %v621_v6, %v402_v31  ;;  %v423_v16 = vsel %vm414_vm4, %v630_v7, %v403_v54  ;;  %v424_v30 = vsel %vm414_vm4, %v574_v0, %v404_v41  ;;  %425 = vst [vmem:[#allocation7] sm:$0xff] %v417_v49 }
 0x173   :  { %426 = vst [vmem:[#allocation7 + $0x8] sm:$0xff] %v418_v50  ;;  %427 = vst [vmem:[#allocation7 + $0x10] sm:$0xff] %v419_v46 }
 0x174   :  { %428 = vst [vmem:[#allocation7 + $0x18] sm:$0xff] %v420_v43  ;;  %429 = vst [vmem:[#allocation7 + $0x20] sm:$0xff] %v421_v35 }
 0x175   :  { %430 = vst [vmem:[#allocation7 + $0x28] sm:$0xff] %v422_v63  ;;  %431 = vst [vmem:[#allocation7 + $0x30] sm:$0xff] %v423_v16 }
 0x176   :  { %432 = vst [vmem:[#allocation7 + $0x38] sm:$0xff] %v424_v30 }
 0x177   :  { %511 = shalt.err (!%p508_p6)
}
 0x178   :  { %s512_s12 = scalar_lea.hbm %s971_s2, 1024 }
 0x179   :  { %p513_p7 = scmp.ne.s32.totalorder %s971_s2, %s512_s12  ;;  %p516_p8 = scmp.lt.u32.totalorder %s512_s12, %s971_s2 }
 0x17b   :  { %p518_p9 = pnand %p516_p8, %p513_p7 }
 0x17d   :  { %521 = shalt.err (!%p518_p9)
}
 0x17e   :  { %442 = dma.vmem_to_hbm [thread:$0]  %s440_s8, 1024, %s971_s2, [#allocation4]  }
 0x17f   :  { %526 = dma.done.wait [#allocation4], 1024  }
 0x180   :  { %527 = vsyncadd [#allocation4], 4294966272 }
 0x181   :  { %446 = vsyncpa [#allocation3], 1 }
 0x182   :  { %447 = vsyncpa [#allocation6], 1 }
 0x183   :  { %448 = vsyncpa [#allocation4], 1 }

</bundles_post_ra>
